<compile_context>
chip_gen: v7x
topology: tpu7x:2x2x1
jax: 0.10.0
libtpu: 0.0.40
codegen_flags: <defaults>
</compile_context>

<pallas_src>
import functools

import jax
import jax.numpy as jnp
from jax import lax
from jax.experimental import pallas as pl
from jax.experimental.pallas import tpu as pltpu  # noqa: F401  (TPU backend)
import numpy as np


def _fused_linear_add_kernel(x_ref, wb_ref, other_ref, o_ref):
    # wb_ref is (K+1, N): rows [0, K) are W^T (pre-transposed, so the RHS is
    # consumed canonically by the MXU), row K is the bias.
    k = wb_ref.shape[0] - 1
    acc = lax.dot_general(
        x_ref[...], wb_ref[:k, :],
        dimension_numbers=(((1,), (0,)), ((), ())),
        preferred_element_type=jnp.float32,
        precision=lax.Precision.HIGHEST,
    )
    # VPU adds: bias row (1,N) broadcast + residual.  Single masked store.
    o_ref[...] = acc + wb_ref[k:, :] + other_ref[...]


@functools.partial(jax.jit, donate_argnums=(2,))
def linear_add(x, wb, other):
    """x:(M,K) f32, wb:(K+1,N) f32 (W^T with bias as last row), other:(M,N) f32."""
    M, K = x.shape
    N = wb.shape[1]
    flops = 2 * M * K * N
    bytes_accessed = 4 * (x.size + wb.size + 2 * other.size)

    return pl.pallas_call(
        _fused_linear_add_kernel,
        out_shape=jax.ShapeDtypeStruct((M, N), jnp.float32),
        in_specs=[
            # Grid-less: full-extent blocks (legal exception to the (8,128) rule).
            pl.BlockSpec((M, K), lambda: (0, 0)),
            pl.BlockSpec((K + 1, N), lambda: (0, 0)),
            pl.BlockSpec((M, N), lambda: (0, 0)),
        ],
        out_specs=pl.BlockSpec((M, N), lambda: (0, 0)),
        # Result lands in-place in `other` (same shape/dtype), which is donated.
        input_output_aliases={2: 0},
        cost_estimate=pl.CostEstimate(
            flops=flops, transcendentals=0, bytes_accessed=bytes_accessed),
    )(x, wb, other)


def make_params():
    """Build the kernel-ready (K+1, N) weight+bias operand ONCE, offline."""
    bias_vals = np.array(
        [0.909703, -0.011381, -0.037906, 1.987684, -1.719269,
         -0.758099, 0.418843, -0.735989, 1.524456, -1.688067],
        dtype=np.float32,
    )
    weight_seed = np.array(
        [-0.240726, -0.0442, -0.540115, -0.269951, -0.476428, 0.091757,
         -0.781907, -0.409872, 0.30332, -0.425438, 0.890566, 0.881638,
         0.463365, -0.63876, 0.092376, 0.230328, -0.570235, -0.504842,
         -1.309621, -0.022977, 0.087456, 0.637414],
        dtype=np.float32,
    )
    n_out, n_in = 10, 17
    reps = -(-(n_out * n_in) // weight_seed.size)
    weight = np.tile(weight_seed, reps)[: n_out * n_in].reshape(n_out, n_in)  # (N,K)
    # Hoisted formatting (done once): pre-transpose to (K,N) and append the
    # bias as the final row so a single operand carries both.
    wb = np.concatenate([weight.T, bias_vals.reshape(1, n_out)], axis=0)  # (K+1,N)
    return jnp.asarray(wb)


if __name__ == "__main__":
    key = jax.random.PRNGKey(0)
    k1, k2 = jax.random.split(key)
    x = jax.random.normal(k1, (7, 17), dtype=jnp.float32)
    other = jax.random.normal(k2, (7, 10), dtype=jnp.float32)

    wb = make_params()

    # Host-side reference computed BEFORE the call (`other` is donated).
    x_np, wb_np, other_np = np.asarray(x), np.asarray(wb), np.asarray(other)
    ref = x_np @ wb_np[:17, :] + wb_np[17:, :] + other_np

    out = jax.block_until_ready(linear_add(x, wb, other))

    assert out.shape == (7, 10)
    np.testing.assert_allclose(np.asarray(out), ref, rtol=1e-5, atol=1e-5)

    print("KERNEL_OK")
</pallas_src>

<mosaic_0001>
module attributes {stable_mosaic.version = 11 : i64} {
  func.func @_fused_linear_add_kernel(%arg0: memref<7x17xf32, #tpu.memory_space<vmem>>, %arg1: memref<18x10xf32, #tpu.memory_space<vmem>>, %arg2: memref<7x10xf32, #tpu.memory_space<vmem>>, %arg3: memref<7x10xf32, #tpu.memory_space<vmem>>) attributes {dimension_semantics = [], scalar_prefetch = 0 : i64, scratch_operands = 0 : i64, tpu.core_type = #tpu.core_type<tc>} {
    %c0 = arith.constant 0 : index
    %c0_0 = arith.constant 0 : index
    %0 = vector.load %arg0[%c0, %c0_0] : memref<7x17xf32, #tpu.memory_space<vmem>>, vector<7x17xf32>
    %c0_1 = arith.constant 0 : index
    %c0_2 = arith.constant 0 : index
    %1 = vector.load %arg1[%c0_1, %c0_2] : memref<18x10xf32, #tpu.memory_space<vmem>>, vector<17x10xf32>
    %cst = arith.constant dense<0.000000e+00> : vector<7x10xf32>
    %2 = tpu.matmul %0, %1, %cst {dimension_numbers = #tpu.dot_dimension_numbers<[1], [0], [0], [1], [0, 0, 1, 1], [], []>, precision = #tpu.contract_precision<fp32>} : vector<7x17xf32>, vector<17x10xf32>, vector<7x10xf32> -> vector<7x10xf32>
    %c17 = arith.constant 17 : index
    %c0_3 = arith.constant 0 : index
    %3 = vector.load %arg1[%c17, %c0_3] : memref<18x10xf32, #tpu.memory_space<vmem>>, vector<1x10xf32>
    %4 = vector.broadcast %3 : vector<1x10xf32> to vector<7x10xf32>
    %5 = arith.addf %2, %4 : vector<7x10xf32>
    %c0_4 = arith.constant 0 : index
    %c0_5 = arith.constant 0 : index
    %6 = vector.load %arg2[%c0_4, %c0_5] : memref<7x10xf32, #tpu.memory_space<vmem>>, vector<7x10xf32>
    %7 = arith.addf %5, %6 : vector<7x10xf32>
    %c0_6 = arith.constant 0 : index
    %c0_7 = arith.constant 0 : index
    %8 = vector.load %arg3[%c0_6, %c0_7] : memref<7x10xf32, #tpu.memory_space<vmem>>, vector<7x10xf32>
    tpu.vector_store %arg3[%c0_6, %c0_7], %7 {strides = array<i32>} : memref<7x10xf32, #tpu.memory_space<vmem>>, vector<7x10xf32>,
    return
  }
}

</mosaic_0001>

<bundles_post_ra>
// kernel: linear_add.1
= control target key start
LH: loop header
LB: loop body
LE: loop exit
PB: predicated region body
PF: predicated region fallthrough
CT: control target
= control target key end

     0   :  { %8 = vsyncpa [#allocation3], 0  ;;  %s767_s0 = inlined_call_operand.vmem [shape: f32[7,17], index: 0, kind: input, shape index: {}]   ;;  %s768_s1 = inlined_call_operand.vmem [shape: f32[18,10], index: 1, kind: input, shape index: {}]   ;;  %s769_s2 = inlined_call_operand.hbm [shape: f32[7,10], index: 2, kind: input, shape index: {}, may-alias: {2,3}]   ;;  %s770_s3 = inlined_call_operand.hbm [shape: f32[7,10], index: 3, kind: output, shape index: {}, may-alias: {2,3}]  }
   0x1   :  { %9 = vsyncpa [#allocation4], 0  ;;  %s685_s12 = smov [#allocation2]   ;;  %s637_s16 = scalar_lea.hbm %s769_s2, 128 }
   0x2   :  { %s20_s13 = sshll.u32 %s685_s12, 4  ;;  %p638_p0 = scmp.ne.s32.totalorder %s769_s2, %s637_s16  ;;  %s21_s13 = int_to_ptr.vmem [resolvable:$true] %s20_s13 }
   0x3   :  { %p641_p1 = scmp.lt.u32.totalorder %s637_s16, %s769_s2 }
   0x5   :  { %p643_p2 = pnand %p641_p1, %p638_p0 }
   0x7   :  { %646 = shalt.err (!%p643_p2)
}
   0x8   :  { %s647_s21 = scalar_lea.vmem %s21_s13, 128  ;;  %p652_p4 = scmp.lt.s32.totalorder %s21_s13, %s21_s13 }
   0x9   :  { %p648_p3 = scmp.ne.s32.totalorder %s21_s13, %s647_s21  ;;  %p653_p5 = scmp.lt.s32.totalorder %s647_s21, %s647_s21 }
   0xb   :  { %p654_p6 = por %p653_p5, %p652_p4 }
   0xd   :  { %p655_p7 = pnand %p654_p6, %p648_p3 }
   0xf   :  { %658 = shalt.err (!%p655_p7)
}
  0x10   :  { %23 = dma.hbm_to_vmem [thread:$0]  %s769_s2, 128, %s21_s13, [#allocation3]  }
  0x11   :  { %681 = dma.done.wait [#allocation3], 128  }
  0x12   :  { %682 = vsyncadd [#allocation3], 4294967168  ;;  %v686_v0 = vmov 0.0|0.0   ;;  %vm687_vm0 = vmmov 0   ;;  %v688_v1 = vmov 0.0   ;;  %vm40_vm1 = vcmask 1040384  }
  0x13   :  { %614 = vmatprep.subr.bf16.mxu0 %v686_v0  ;;  %617 = vmatprep.subr.bf16.mxu1 %v686_v0  ;;  %vm36_vm2 = vcmask 138240   ;;  %v28_v2 = vld [vmem:[%s768_s1] sm:$0xff]  ;;  %v29_v3 = vld [vmem:[%s768_s1 + $0x8] sm:$0xff]  ;;  %v30_v4 = vld [vmem:[%s768_s1 + $0x10] sm:$0x1]  ;;  %s689_s5 = smov [#allocation5]  }
  0x14   :  { %566 = vmatprep.mubr.msk.f32.mxu0 %vm687_vm0, %v688_v1  ;;  %575 = vmatprep.mubr.msk.f32.mxu1 %vm687_vm0, %v688_v1  ;;  %v45_v5 = vand.u32 4294901760, %v28_v2  ;;  %v48_v6 = vand.u32 4294901760, %v29_v3  ;;  %v42_v7 = vsel %vm40_vm1, %v30_v4, 0  ;;  %v27_v8 = vld [vmem:[%s767_s0] sm:$0x7f]  ;;  %s526_s6 = sshll.u32 %s689_s5, 4  ;;  %s527_s6 = int_to_ptr.vmem [resolvable:$true] %s526_s6 }
  0x15   :  { %v51_v9 = vand.u32 4294901760, %v42_v7  ;;  %v38_v10 = vsel %vm36_vm2, %v27_v8, 0  ;;  %v535_v32 = vld [vmem:[%s768_s1 + $0x11] ss:$0 sm:$0xff]  ;;  %v516_v49 = vld [vmem:[#allocation2] sm:$0x7f]  ;;  %p664_p9 = scmp.lt.s32.totalorder %s527_s6, %s527_s6 }
  0x16   :  { %v615_v11 = vpack.c.bf16 %v48_v6, %v45_v5  ;;  %v124_v12 = vsub.f32 %v28_v2, %v45_v5  ;;  %v131_v13 = vsub.f32 %v29_v3, %v48_v6  ;;  %v112_v14 = vand.u32 4294901760, %v38_v10  ;;  %s659_s1 = scalar_lea.vmem %s527_s6, 128 }
  0x17   :  { %v138_v15 = vsub.f32 %v42_v7, %v51_v9  ;;  %vm518_vm3 = vcmask 79872   ;;  %p660_p8 = scmp.ne.s32.totalorder %s527_s6, %s659_s1  ;;  %p665_p10 = scmp.lt.s32.totalorder %s659_s1, %s659_s1 }
  0x18   :  { %616 = vmatpush3.bf16.msra.mxu0 %v615_v11  ;;  %v125_v16 = vand.u32 4294901760, %v124_v12  ;;  %v132_v17 = vand.u32 4294901760, %v131_v13  ;;  %v113_v18 = vsub.f32 %v38_v10, %v112_v14  ;;  %v621_v27 = vpack.c.bf16 %v131_v13, %v124_v12 }
  0x19   :  { %564 = vmatprep.subr.mxu0 %v688_v1  ;;  %v139_v19 = vand.u32 4294901760, %v138_v15  ;;  %p666_p11 = por %p665_p10, %p664_p9 }
  0x1a   :  { %v126_v20 = vsub.f32 %v124_v12, %v125_v16  ;;  %v133_v21 = vsub.f32 %v131_v13, %v132_v17  ;;  %v114_v22 = vand.u32 4294901760, %v113_v18  ;;  %v627_v31 = vpack.c.bf16 %v132_v17, %v125_v16 }
  0x1b   :  { %v140_v26 = vsub.f32 %v138_v15, %v139_v19  ;;  %p667_p12 = pnand %p666_p11, %p660_p8 }
  0x1c   :  { %565 = vmatpush3.msra.mxu0 %v51_v9  ;;  %v127_v23 = vand.u32 4294901760, %v126_v20  ;;  %v134_v24 = vand.u32 4294901760, %v133_v21  ;;  %v115_v25 = vsub.f32 %v113_v18, %v114_v22 }
  0x1d   :  { %620 = vmatprep.subr.bf16.mxu0 %v686_v0  ;;  %v141_v30 = vand.u32 4294901760, %v140_v26 }
  0x1e   :  { %v618_v28 = vpack.c.bf16 %v134_v24, %v127_v23  ;;  %v116_v29 = vand.u32 4294901760, %v115_v25 }
  0x20   :  { %619 = vmatpush3.bf16.msra.mxu1 %v618_v28  ;;  %567 = vmatmul.mubr.f32.vlgmr.msra.gmra.mrb[0].mxu0 %v116_v29 }
  0x21   :  { %622 = vmatpush3.bf16.msra.mxu0 %v621_v27  ;;  %573 = vmatprep.subr.mxu1 %v688_v1 }
  0x22   :  { %582 = vmatprep.subr.mxu0 %v688_v1  ;;  %584 = vmatprep.mubr.msk.f32.mxu0 %vm687_vm0, %v688_v1 }
  0x24   :  { %574 = vmatpush3.msra.mxu1 %v141_v30 }
  0x25   :  { %576 = vmatmul.mubr.f32.vlgmr.msra.gmra.mrb[0].mxu1 %v112_v14  ;;  %623 = vmatprep.subr.bf16.mxu1 %v686_v0 }
  0x26   :  { %583 = vmatpush3.msra.mxu0 %v138_v15  ;;  %625 = vmatpush3.bf16.msra.mxu1 %v615_v11 }
  0x27   :  { %626 = vmatprep.subr.bf16.mxu0 %v686_v0  ;;  %585 = vmatmul.mubr.f32.vlgmr.msra.gmra.mrb[2].mxu0 %v113_v18 }
  0x28   :  { %628 = vmatpush3.bf16.msra.mxu0 %v627_v31  ;;  %591 = vmatprep.subr.mxu1 %v688_v1 }
  0x29   :  { %593 = vmatprep.mubr.msk.f32.mxu1 %vm687_vm0, %v688_v1  ;;  %600 = vmatprep.subr.mxu0 %v688_v1 }
  0x2a   :  { %592 = vmatpush3.msra.mxu1 %v51_v9  ;;  %602 = vmatprep.mubr.msk.f32.mxu0 %vm687_vm0, %v688_v1 }
  0x2b   :  { %594 = vmatmul.mubr.f32.vlgmr.msra.gmra.mrb[2].mxu1 %v114_v22  ;;  %629 = vmatprep.subr.bf16.mxu1 %v686_v0 }
  0x2c   :  { %601 = vmatpush3.msra.mxu0 %v139_v19  ;;  %631 = vmatpush3.bf16.msra.mxu1 %v615_v11 }
  0x2d   :  { %603 = vmatmul.mubr.f32.vlgmr.msra.gmra.mrb[4].mxu0 %v112_v14  ;;  %609 = vmatprep.subr.mxu1 %v688_v1 }
  0x2e   :  { %611 = vmatprep.mubr.msk.f32.mxu1 %vm687_vm0, %v688_v1 }
  0x30   :  { %610 = vmatpush3.msra.mxu1 %v51_v9 }
  0x31   :  { %612 = vmatmul.mubr.f32.vlgmr.msra.gmra.mrb[4].mxu1 %v112_v14 }
  0xf3   :  { %v118_v33 = vpop.f32.mrb[0].mxu0 }
  0xf4   :  { %v568_v34 = vpop.f32.mrb[1].mxu0  ;;  %v119_v35 = vadd.f32 %v535_v32, %v118_v33 }
  0xf8   :  { %v204_v36 = vpop.f32.mrb[0].mxu1 }
  0xf9   :  { %v205_v37 = vadd.f32 %v204_v36, %v119_v35  ;;  %v577_v38 = vpop.f32.mrb[1].mxu1 }
  0xfa   :  { %v282_v39 = vpop.f32.mrb[2].mxu0 }
  0xfb   :  { %v283_v40 = vadd.f32 %v282_v39, %v205_v37  ;;  %v586_v41 = vpop.f32.mrb[3].mxu0 }
  0xfe   :  { %v358_v42 = vpop.f32.mrb[2].mxu1 }
  0xff   :  { %v359_v43 = vadd.f32 %v358_v42, %v283_v40  ;;  %v595_v44 = vpop.f32.mrb[3].mxu1 }
 0x100   :  { %v438_v45 = vpop.f32.mrb[4].mxu0 }
 0x101   :  { %v439_v46 = vadd.f32 %v438_v45, %v359_v43  ;;  %v604_v47 = vpop.f32.mrb[5].mxu0 }
 0x104   :  { %v512_v48 = vpop.f32.mrb[4].mxu1 }
 0x105   :  { %v513_v50 = vadd.f32 %v512_v48, %v439_v46  ;;  %v613_v51 = vpop.f32.mrb[5].mxu1 }
 0x107   :  { %v517_v52 = vadd.f32 %v516_v49, %v513_v50 }
 0x109   :  { %519 = vst.msk [vmem:[#allocation5] sm:$0x7f] %vm518_vm3, %v517_v52 }
 0x10a   :  { %670 = shalt.err (!%p667_p12)
}
 0x10b   :  { %s671_s9 = scalar_lea.hbm %s770_s3, 128 }
 0x10c   :  { %p672_p13 = scmp.ne.s32.totalorder %s770_s3, %s671_s9  ;;  %p675_p0 = scmp.lt.u32.totalorder %s671_s9, %s770_s3 }
 0x10e   :  { %p677_p1 = pnand %p675_p0, %p672_p13 }
 0x110   :  { %680 = shalt.err (!%p677_p1)
}
 0x111   :  { %529 = dma.vmem_to_hbm [thread:$0]  %s527_s6, 128, %s770_s3, [#allocation4]  }
 0x112   :  { %683 = dma.done.wait [#allocation4], 128  }
 0x113   :  { %684 = vsyncadd [#allocation4], 4294967168 }
 0x114   :  { %533 = vsyncpa [#allocation3], 1 }
 0x115   :  { %534 = vsyncpa [#allocation4], 1 }

</bundles_post_ra>
